<compile_context>
chip_gen: v6e
topology: v6e:2x2x1
jax: 0.10.0
libtpu: 0.0.40
codegen_flags: <defaults>
</compile_context>

<pallas_src>
import functools

import jax
import jax.numpy as jnp
import numpy as np
from jax.experimental import pallas as pl
from jax.experimental.pallas import tpu as pltpu

_LANE = 128
_SUBLANE = 8


def _round_up(x, m):
    return (x + m - 1) // m * m


def _l2_normalize_f32(x):
    # matches torch.nn.functional.normalize(x, dim=-1, eps=1e-12), in f32
    x = x.astype(jnp.float32)
    norm = jnp.sqrt(jnp.sum(x * x, axis=-1, keepdims=True))
    return x / jnp.maximum(norm, 1e-12)


def _supcon_kernel(a_ref, c_ref, p_ref, z_acc, ps_acc, *,
                   n_pos, n_neg, loss_scale, inv_b, exp_dtype):
    """One (row-tile, view) grid step.

    a_ref : (D_pad, tb)  normalized anchor^T, pre-scaled by 1/T (mxu dtype)
    c_ref : (B,  D_pad)  normalized contrast view v (mxu dtype); v < n_neg => negative
    p_ref : (1,  tb)     per-sample loss (f32), written once at the last view
    z_acc : (1,  tb)     denominator: sum_v sum_j exp(s - max_j s)      (f32)
    ps_acc: (1,  tb)     numerator:   sum_v (mean_j s - max_j s)        (f32)
    """
    v = pl.program_id(1)
    n_views = n_neg + n_pos

    @pl.when(v == 0)
    def _init():
        z_acc[...] = jnp.zeros_like(z_acc)
        ps_acc[...] = jnp.zeros_like(ps_acc)

    # s[j, i] = <contrast_j, anchor_i> / T ; standard (B,D)x(D,tb) contraction,
    # f32 accumulation on the MXU, no transpose of the resident anchor tile.
    s = jax.lax.dot_general(c_ref[...], a_ref[...], (((1,), (0,)), ((), ())),
                            preferred_element_type=jnp.float32)        # (B, tb)
    m = jnp.max(s, axis=0, keepdims=True)                              # (1, tb)

    @pl.when(v < n_neg)
    def _neg_step():
        # exp on the EUP; bf16 exponent ~halves EUP time on v6e/v7x, sum stays f32.
        e = jnp.exp((s - m).astype(exp_dtype)).astype(jnp.float32)
        z_acc[...] += jnp.sum(e, axis=0, keepdims=True)

    @pl.when(v >= n_neg)
    def _pos_step():
        # mean_j s directly from the s tile we already hold (VPU reduce, exact).
        mean_j = jnp.sum(s, axis=0, keepdims=True) * inv_b
        ps_acc[...] += mean_j - m

    @pl.when(v == n_views - 1)
    def _finalize():
        log_z = jnp.log(z_acc[...])
        p_ref[...] = loss_scale * (ps_acc[...] * (1.0 / n_pos) - log_z)


def supcon_loss(anchor, pos, neg, *, temperature=0.1, base_temperature=0.1,
                mxu_dtype=jnp.bfloat16, exp_dtype=None, block_rows=None,
                view_buffers=2):
    """anchor: [B, D], pos: [B, V, D], neg: [B, Vn, D] -> (scalar loss, p[B])."""
    B, D = anchor.shape
    V = pos.shape[1]
    Vn = neg.shape[1]
    assert V >= 1 and Vn >= 1
    n_views = Vn + V

    if exp_dtype is None:
        exp_dtype = (jnp.bfloat16
                     if jnp.dtype(mxu_dtype) == jnp.dtype(jnp.bfloat16)
                     else jnp.float32)

    D_pad = _round_up(D, _LANE)

    # --- wrapper-side prep: normalize in f32, zero-pad the feature dim (exact:
    # zero padding changes neither norms nor dot products), cast to mxu dtype so
    # the kernel streams half the bytes.  Negatives first, positives second, so
    # view index v < Vn is a negative view.
    contrast = jnp.concatenate([neg, pos], axis=1)                  # [B, Vn+V, D]
    contrast = _l2_normalize_f32(contrast)
    if D_pad != D:
        contrast = jnp.pad(contrast, ((0, 0), (0, 0), (0, D_pad - D)))
    contrast2 = contrast.astype(mxu_dtype).reshape(B, n_views * D_pad)

    # Anchor: normalize, fold 1/T, transpose to (D_pad, B) so the in-kernel MXU
    # contraction is the standard (B,D)x(D,tb) form (no per-view transpose).
    a_n = _l2_normalize_f32(anchor) * (1.0 / temperature)
    if D_pad != D:
        a_n = jnp.pad(a_n, ((0, 0), (0, D_pad - D)))
    anchor_t = a_n.astype(mxu_dtype).T                              # [D_pad, B]

    # --- row tile over the anchor axis: >= 2 tiles once B > 128 so both v7x
    # TensorCores get work; tiles are multiples of 128/256 (lane-dense output,
    # MXU-friendly) and B is zero-padded up to the tile.
    if block_rows is not None:
        tb = block_rows
        assert tb % _SUBLANE == 0
    elif B <= 128:
        tb = _round_up(B, _SUBLANE)       # tiny batch: single row tile
    elif B <= 512:
        tb = 128
    else:
        tb = 256
    B_pad = _round_up(B, tb)
    if B_pad != B:
        # zero anchor columns give finite garbage losses, sliced off below
        anchor_t = jnp.pad(anchor_t, ((0, 0), (0, B_pad - B)))
    n_row_tiles = B_pad // tb

    # TODO(synk): for extreme B where the (B, tb) f32 logits temporary and the
    # (B, D_pad) view buffers exceed VMEM, add a column grid axis over the
    # contrast samples with flash-style online max/sum.
    # TODO(synk): when tb >> D, a col-sum matvec for mean_j would be cheaper
    # than the full (B, tb) sum used here.

    # --- explicit VMEM budget: anchor + view double buffers, output/accumulator
    # slabs, and the f32 logits temporaries; capped by the chip's capacity.
    mxu_bytes = jnp.dtype(mxu_dtype).itemsize
    tb_lanes = _round_up(tb, _LANE)
    vmem_est = (2 * D_pad * tb * mxu_bytes              # anchor tile double buffer
                + max(2, view_buffers) * B * D_pad * mxu_bytes  # view buffers
                + 4 * B * tb * 4                        # s / exp / reduce temps (f32)
                + 4 * _SUBLANE * tb_lanes * 4)          # output + accumulators
    try:
        vmem_cap = int(pltpu.get_tpu_info().vmem_capacity_bytes) * 3 // 4
    except Exception:  # pragma: no cover - conservative fallback
        vmem_cap = 64 << 20
    vmem_limit = int(min(max(vmem_est * 3 // 2, 32 << 20), vmem_cap))

    kernel = functools.partial(
        _supcon_kernel,
        n_pos=V, n_neg=Vn,
        loss_scale=float(-(temperature / base_temperature)),
        inv_b=float(1.0 / B),
        exp_dtype=exp_dtype,
    )

    view_spec_kwargs = {}
    if view_buffers != 2:
        view_spec_kwargs["pipeline_mode"] = pl.Buffered(view_buffers)

    grid_spec = pltpu.PrefetchScalarGridSpec(
        num_scalar_prefetch=0,
        grid=(n_row_tiles, n_views),
        in_specs=[
            # anchor^T row tile, resident across the inner view axis
            pl.BlockSpec((D_pad, tb), lambda r, v: (0, r)),
            # contrast view v (negatives first, then positives)
            pl.BlockSpec((B, D_pad), lambda r, v: (0, v), **view_spec_kwargs),
        ],
        out_specs=pl.BlockSpec((1, tb), lambda r, v: (0, r)),
        scratch_shapes=[
            pltpu.VMEM((1, tb), jnp.float32),     # Z accumulator
            pltpu.VMEM((1, tb), jnp.float32),     # sum_v (mean_v - max_v)
        ],
    )

    p = pl.pallas_call(
        kernel,
        grid_spec=grid_spec,
        out_shape=jax.ShapeDtypeStruct((1, B_pad), jnp.float32),
        compiler_params=pltpu.CompilerParams(
            dimension_semantics=("parallel", "arbitrary"),
            vmem_limit_bytes=vmem_limit),
    )(anchor_t, contrast2)

    p = p[0, :B]                # [B] per-sample loss (torch `p`, kept on device)
    loss = jnp.mean(p)          # scalar (torch `loss`)
    return loss, p


def _reference(anchor, pos, neg, *, temperature=0.1, base_temperature=0.1):
    a = _l2_normalize_f32(anchor)
    p_ = _l2_normalize_f32(pos)
    n_ = _l2_normalize_f32(neg)
    s_pos = jnp.einsum('id,jvd->vij', a, p_) / temperature
    s_neg = jnp.einsum('id,jvd->vij', a, n_) / temperature
    logits_pos = s_pos - jnp.max(s_pos, axis=2, keepdims=True)
    logits_neg = s_neg - jnp.max(s_neg, axis=2, keepdims=True)
    z = jnp.sum(jnp.exp(logits_neg), axis=2, keepdims=True)
    z = jnp.sum(z, axis=0, keepdims=True)                     # [1, B, 1]
    log_prob = logits_pos - jnp.log(z)
    mlp = jnp.mean(log_prob, axis=2)                          # [V, B]
    loss_vb = -(temperature / base_temperature) * mlp
    return jnp.mean(loss_vb), jnp.mean(loss_vb, axis=0)


def _check(name, got, want, rtol, atol):
    got = np.asarray(jax.block_until_ready(got))
    want = np.asarray(want)
    if not np.allclose(got, want, rtol=rtol, atol=atol):
        raise AssertionError(f"Pallas SupConLoss mismatch: {name}")


if __name__ == "__main__":
    key = jax.random.PRNGKey(0)

    # --- case 1: small, lane-aligned shapes (B=8, D=128, V=Vn=4)
    B, D, V, Vn = 8, 128, 4, 4
    k1, k2, k3, k4 = jax.random.split(key, 4)
    anchor = jax.random.normal(k1, (B, D), dtype=jnp.float32)
    pos = jax.random.normal(k2, (B, V, D), dtype=jnp.float32)
    neg = jax.random.normal(k3, (B, Vn, D), dtype=jnp.float32)

    ref_loss, ref_p = _reference(anchor, pos, neg)
    ref_loss = np.asarray(ref_loss)
    ref_p = np.asarray(ref_p)

    # exact-math path (f32 MXU + f32 exp): tight check against the reference
    loss32, p32 = supcon_loss(anchor, pos, neg, mxu_dtype=jnp.float32)
    _check("f32 loss", loss32, ref_loss, 2e-4, 2e-4)
    _check("f32 p", p32, ref_p, 2e-4, 2e-4)

    # default fast path (bf16 MXU operands + bf16 exp, f32 accumulation)
    loss_bf, p_bf = supcon_loss(anchor, pos, neg)
    _check("bf16 loss", loss_bf, ref_loss, 2e-2, 2e-2)
    _check("bf16 p", p_bf, ref_p, 2e-2, 2e-2)

    # --- case 2: non-aligned B/D, multiple row tiles (exercises B/D padding)
    B2, D2, V2, Vn2 = 160, 96, 3, 2
    k5, k6, k7 = jax.random.split(k4, 3)
    anchor2 = jax.random.normal(k5, (B2, D2), dtype=jnp.float32)
    pos2 = jax.random.normal(k6, (B2, V2, D2), dtype=jnp.float32)
    neg2 = jax.random.normal(k7, (B2, Vn2, D2), dtype=jnp.float32)

    ref_loss2, ref_p2 = _reference(anchor2, pos2, neg2)
    loss2, p2 = supcon_loss(anchor2, pos2, neg2, mxu_dtype=jnp.float32)
    _check("tiled f32 loss", loss2, np.asarray(ref_loss2), 2e-4, 2e-4)
    _check("tiled f32 p", p2, np.asarray(ref_p2), 2e-4, 2e-4)

    print("KERNEL_OK")
</pallas_src>

<mosaic_0001>
module attributes {stable_mosaic.version = 11 : i64} {
  func.func @_supcon_kernel(%arg0: i32, %arg1: i32, %arg2: memref<128x8xf32, #tpu.memory_space<vmem>>, %arg3: memref<8x128xf32, #tpu.memory_space<vmem>>, %arg4: memref<1x8xf32, #tpu.memory_space<vmem>>, %arg5: memref<1x8xf32, #tpu.memory_space<vmem>>, %arg6: memref<1x8xf32, #tpu.memory_space<vmem>>) attributes {dimension_semantics = [#tpu.dimension_semantics<parallel>, #tpu.dimension_semantics<arbitrary>], iteration_bounds = array<i64: 1, 8>, scalar_prefetch = 0 : i64, scratch_operands = 2 : i64, tpu.core_type = #tpu.core_type<tc>, window_params = [{transform_indices = @transform_0, window_bounds = array<i64: 128, 8>}, {transform_indices = @transform_1, window_bounds = array<i64: 8, 128>}, {transform_indices = @transform_2, window_bounds = array<i64: 1, 8>}]} {
    %c0_i32 = arith.constant 0 : i32
    %0 = arith.cmpi eq, %arg1, %c0_i32 : i32
    %1 = arith.extui %0 : i1 to i32
    %c0_i32_0 = arith.constant 0 : i32
    %2 = arith.cmpi ne, %1, %c0_i32_0 : i32
    scf.if %2 {
      %cst_9 = arith.constant 0.000000e+00 : f32
      %17 = vector.broadcast %cst_9 : f32 to vector<1x8xf32>
      %c0_10 = arith.constant 0 : index
      %c0_11 = arith.constant 0 : index
      %18 = vector.load %arg5[%c0_10, %c0_11] : memref<1x8xf32, #tpu.memory_space<vmem>>, vector<1x8xf32>
      tpu.vector_store %arg5[%c0_10, %c0_11], %17 {strides = array<i32>} : memref<1x8xf32, #tpu.memory_space<vmem>>, vector<1x8xf32>,
      %cst_12 = arith.constant 0.000000e+00 : f32
      %19 = vector.broadcast %cst_12 : f32 to vector<1x8xf32>
      %c0_13 = arith.constant 0 : index
      %c0_14 = arith.constant 0 : index
      %20 = vector.load %arg6[%c0_13, %c0_14] : memref<1x8xf32, #tpu.memory_space<vmem>>, vector<1x8xf32>
      tpu.vector_store %arg6[%c0_13, %c0_14], %19 {strides = array<i32>} : memref<1x8xf32, #tpu.memory_space<vmem>>, vector<1x8xf32>,
    } else {
    }
    %c0 = arith.constant 0 : index
    %c0_1 = arith.constant 0 : index
    %3 = vector.load %arg3[%c0, %c0_1] : memref<8x128xf32, #tpu.memory_space<vmem>>, vector<8x128xf32>
    %c0_2 = arith.constant 0 : index
    %c0_3 = arith.constant 0 : index
    %4 = vector.load %arg2[%c0_2, %c0_3] : memref<128x8xf32, #tpu.memory_space<vmem>>, vector<128x8xf32>
    %cst = arith.constant dense<0.000000e+00> : vector<8x8xf32>
    %5 = tpu.matmul %3, %4, %cst {dimension_numbers = #tpu.dot_dimension_numbers<[1], [0], [0], [1], [0, 0, 1, 1], [], []>} : vector<8x128xf32>, vector<128x8xf32>, vector<8x8xf32> -> vector<8x8xf32>
    %cst_4 = arith.constant dense<0xFF800000> : vector<8xf32>
    %6 = vector.multi_reduction <maximumf>, %5, %cst_4 [0] : vector<8x8xf32> to vector<8xf32>
    %7 = vector.shape_cast %6 : vector<8xf32> to vector<1x8xf32>
    %c4_i32 = arith.constant 4 : i32
    %8 = arith.cmpi slt, %arg1, %c4_i32 : i32
    %9 = arith.extui %8 : i1 to i32
    %c0_i32_5 = arith.constant 0 : i32
    %10 = arith.cmpi ne, %9, %c0_i32_5 : i32
    scf.if %10 {
      %17 = vector.broadcast %7 : vector<1x8xf32> to vector<8x8xf32>
      %18 = arith.subf %5, %17 : vector<8x8xf32>
      %19 = math.exp %18 : vector<8x8xf32>
      %c0_9 = arith.constant 0 : index
      %c0_10 = arith.constant 0 : index
      %20 = vector.load %arg5[%c0_9, %c0_10] : memref<1x8xf32, #tpu.memory_space<vmem>>, vector<1x8xf32>
      %cst_11 = arith.constant dense<0.000000e+00> : vector<8xf32>
      %21 = vector.multi_reduction <add>, %19, %cst_11 [0] : vector<8x8xf32> to vector<8xf32>
      %22 = vector.shape_cast %21 : vector<8xf32> to vector<1x8xf32>
      %23 = arith.addf %20, %22 : vector<1x8xf32>
      %c0_12 = arith.constant 0 : index
      %c0_13 = arith.constant 0 : index
      %24 = vector.load %arg5[%c0_12, %c0_13] : memref<1x8xf32, #tpu.memory_space<vmem>>, vector<1x8xf32>
      tpu.vector_store %arg5[%c0_12, %c0_13], %23 {strides = array<i32>} : memref<1x8xf32, #tpu.memory_space<vmem>>, vector<1x8xf32>,
    } else {
    }
    %c4_i32_6 = arith.constant 4 : i32
    %11 = arith.cmpi sge, %arg1, %c4_i32_6 : i32
    %12 = arith.extui %11 : i1 to i32
    %c0_i32_7 = arith.constant 0 : i32
    %13 = arith.cmpi ne, %12, %c0_i32_7 : i32
    scf.if %13 {
      %cst_9 = arith.constant dense<0.000000e+00> : vector<8xf32>
      %17 = vector.multi_reduction <add>, %5, %cst_9 [0] : vector<8x8xf32> to vector<8xf32>
      %18 = vector.shape_cast %17 : vector<8xf32> to vector<1x8xf32>
      %cst_10 = arith.constant 1.250000e-01 : f32
      %19 = vector.broadcast %cst_10 : f32 to vector<1x8xf32>
      %20 = arith.mulf %18, %19 : vector<1x8xf32>
      %c0_11 = arith.constant 0 : index
      %c0_12 = arith.constant 0 : index
      %21 = vector.load %arg6[%c0_11, %c0_12] : memref<1x8xf32, #tpu.memory_space<vmem>>, vector<1x8xf32>
      %22 = arith.subf %20, %7 : vector<1x8xf32>
      %23 = arith.addf %21, %22 : vector<1x8xf32>
      %c0_13 = arith.constant 0 : index
      %c0_14 = arith.constant 0 : index
      %24 = vector.load %arg6[%c0_13, %c0_14] : memref<1x8xf32, #tpu.memory_space<vmem>>, vector<1x8xf32>
      tpu.vector_store %arg6[%c0_13, %c0_14], %23 {strides = array<i32>} : memref<1x8xf32, #tpu.memory_space<vmem>>, vector<1x8xf32>,
    } else {
    }
    %c7_i32 = arith.constant 7 : i32
    %14 = arith.cmpi eq, %arg1, %c7_i32 : i32
    %15 = arith.extui %14 : i1 to i32
    %c0_i32_8 = arith.constant 0 : i32
    %16 = arith.cmpi ne, %15, %c0_i32_8 : i32
    scf.if %16 {
      %c0_9 = arith.constant 0 : index
      %c0_10 = arith.constant 0 : index
      %17 = vector.load %arg5[%c0_9, %c0_10] : memref<1x8xf32, #tpu.memory_space<vmem>>, vector<1x8xf32>
      %18 = math.log %17 : vector<1x8xf32>
      %c0_11 = arith.constant 0 : index
      %c0_12 = arith.constant 0 : index
      %19 = vector.load %arg6[%c0_11, %c0_12] : memref<1x8xf32, #tpu.memory_space<vmem>>, vector<1x8xf32>
      %cst_13 = arith.constant 2.500000e-01 : f32
      %20 = vector.broadcast %cst_13 : f32 to vector<1x8xf32>
      %21 = arith.mulf %19, %20 : vector<1x8xf32>
      %22 = arith.subf %21, %18 : vector<1x8xf32>
      %cst_14 = arith.constant -1.000000e+00 : f32
      %23 = vector.broadcast %cst_14 : f32 to vector<1x8xf32>
      %24 = arith.mulf %23, %22 : vector<1x8xf32>
      %c0_15 = arith.constant 0 : index
      %c0_16 = arith.constant 0 : index
      %25 = vector.load %arg4[%c0_15, %c0_16] : memref<1x8xf32, #tpu.memory_space<vmem>>, vector<1x8xf32>
      tpu.vector_store %arg4[%c0_15, %c0_16], %24 {strides = array<i32>} : memref<1x8xf32, #tpu.memory_space<vmem>>, vector<1x8xf32>,
    } else {
    }
    return
  }
  func.func @transform_0(%arg0: i32, %arg1: i32) -> (i32, i32) {
    %c0_i32 = arith.constant 0 : i32
    %c0_i32_0 = arith.constant 0 : i32
    return %c0_i32, %arg0 : i32, i32
  }
  func.func @transform_1(%arg0: i32, %arg1: i32) -> (i32, i32) {
    %c0_i32 = arith.constant 0 : i32
    %c0_i32_0 = arith.constant 0 : i32
    return %c0_i32, %arg1 : i32, i32
  }
  func.func @transform_2(%arg0: i32, %arg1: i32) -> (i32, i32) {
    %c0_i32 = arith.constant 0 : i32
    %c0_i32_0 = arith.constant 0 : i32
    return %c0_i32, %arg0 : i32, i32
  }
}

</mosaic_0001>

<bundles_post_ra>
// kernel: tpu_custom_call.1
= control target key start
LH: loop header
LB: loop body
LE: loop exit
PB: predicated region body
PF: predicated region fallthrough
CT: control target
= control target key end

     0   :  { %7 = vsyncpa [#allocation5], 0  ;;  %s560_s9 = smov 0   ;;  %s562_s10 = smov 0   ;;  %s670_s0 = inlined_call_operand.vmem [shape: f32[128,8], index: 0, kind: input, shape index: {}]   ;;  %s671_s1 = inlined_call_operand.vmem [shape: f32[8,1024], index: 1, kind: input, shape index: {}]   ;;  %s672_s2 = inlined_call_operand.hbm [shape: f32[1,8], index: 2, kind: output, shape index: {}]  }
   0x1   :  { %s564_s11 = smov 0  }
   0x2 LB: > { %s385_s12 = sadd.s32 4294967295, %s539_s11   ;;  %s22_s13 = sadd.s32 1, %s535_s10  ;;  %s539_s11 = sphi %s564_s11, %s13_s11   ;;  %s535_s10 = sphi %s562_s10, %s675_s10   ;;  %s531_s9 = sphi %s560_s9, %s674_s9  }
   0x3   : > { %p23_p0 = scmp.ge.s32.totalorder %s22_s13, 8  ;;  %p389_p1 = scmp.ge.s32.totalorder %s539_s11, 1 }
   0x4   : > { %p133_p2 = scmp.lt.s32.totalorder %s539_s11, 9 }
   0x5   : > { %s677_s13 = smov (%p23_p0, %s22_s13), 0 }
   0x6   : > { %p134_p3 = pnand %p389_p1, %p133_p2 }
   0x7   : > { %p157_p4 = scmp.lt.s32.totalorder (!%p134_p3), %s531_s9, 7  ;;  %p391_p5 = scmp.ne.s32.totalorder (!%p134_p3), %s531_s9, 0 }
   0x8   : > { %137 = sbr.rel (%p134_p3) target bundleno = 365 (0x16d), region = 28 }
   0xd   : > { %s158_s14 = scalar_select %p157_p4, %s531_s9, 7 }
   0xe   : > { %164 = sbr.rel (%p391_p5) target bundleno = 21 (0x15), region = 32 }
   0xf   : > { %s390_s15 = sshll.u32 %s158_s14, 3 }
  0x10   : > { %s586_s18 = scalar_lea.vmem %s671_s1, %s390_s15 }
  0x13   : > { %vm165_vm0 = vcmask 57344   ;;  %v541_v0 = vmov 0.0  }
  0x14   : > { %166 = vst.msk [vmem:[#allocation2] sm:$0x1] %vm165_vm0, %v541_v0  ;;  %167 = vst.msk [vmem:[#allocation3] sm:$0x1] %vm165_vm0, %v541_v0 }
  0x15 PF: > { %v184_v1 = vld [vmem:[%s670_s0 + $0x78] sm:$0xff]  ;;  %v542_v2 = vmov 0.0   ;;  %v183_v3 = vld [vmem:[%s670_s0 + $0x70] sm:$0xff]  ;;  %vm543_vm1 = vmmov 0   ;;  %v182_v4 = vld [vmem:[%s670_s0 + $0x68] sm:$0xff]  ;;  %vm255_vm2 = vcmask 64512  }
  0x16   : > { %416 = vmatprep.subr.mxu0 %v542_v2  ;;  %448 = vmatprep.mubr.msk.f32.mxu0 %vm543_vm1, %v542_v2  ;;  %v181_v5 = vld [vmem:[%s670_s0 + $0x60] sm:$0xff]  ;;  %v180_v6 = vld [vmem:[%s670_s0 + $0x58] sm:$0xff]  ;;  %v179_v7 = vld [vmem:[%s670_s0 + $0x50] sm:$0xff]  ;;  %p392_p6 = scmp.ge.s32.totalorder %s531_s9, 4 }
  0x17   : > { %417 = vmatpush3.msra.mxu0 %v184_v1  ;;  %v178_v8 = vld [vmem:[%s670_s0 + $0x48] sm:$0xff]  ;;  %v177_v9 = vld [vmem:[%s670_s0 + $0x40] sm:$0xff]  ;;  %v176_v10 = vld [vmem:[%s670_s0 + $0x38] sm:$0xff] }
  0x18   : > { %418 = vmatprep.subr.mxu0 %v542_v2  ;;  %v175_v11 = vld [vmem:[%s670_s0 + $0x30] sm:$0xff]  ;;  %v174_v12 = vld [vmem:[%s670_s0 + $0x28] sm:$0xff]  ;;  %v173_v13 = vld [vmem:[%s670_s0 + $0x20] sm:$0xff] }
  0x19   : > { %419 = vmatpush3.msra.mxu0 %v183_v3  ;;  %v172_v14 = vld [vmem:[%s670_s0 + $0x18] sm:$0xff]  ;;  %v171_v15 = vld [vmem:[%s670_s0 + $0x10] sm:$0xff]  ;;  %v170_v16 = vld [vmem:[%s670_s0 + $0x8] sm:$0xff] }
  0x1a   : > { %420 = vmatprep.subr.mxu0 %v542_v2  ;;  %v169_v17 = vld [vmem:[%s670_s0] sm:$0xff] }
  0x1b   : > { %421 = vmatpush3.msra.mxu0 %v182_v4  ;;  %v168_v18 = vld [vmem:[%s586_s18] sm:$0xff] }
  0x1c   : > { %422 = vmatprep.subr.mxu0 %v542_v2 }
  0x1d   : > { %423 = vmatpush3.msra.mxu0 %v181_v5 }
  0x1e   : > { %424 = vmatprep.subr.mxu0 %v542_v2 }
  0x1f   : > { %425 = vmatpush3.msra.mxu0 %v180_v6 }
  0x20   : > { %426 = vmatprep.subr.mxu0 %v542_v2 }
  0x21   : > { %427 = vmatpush3.msra.mxu0 %v179_v7 }
  0x22   : > { %428 = vmatprep.subr.mxu0 %v542_v2 }
  0x23   : > { %429 = vmatpush3.msra.mxu0 %v178_v8 }
  0x24   : > { %430 = vmatprep.subr.mxu0 %v542_v2 }
  0x25   : > { %431 = vmatpush3.msra.mxu0 %v177_v9 }
  0x26   : > { %432 = vmatprep.subr.mxu0 %v542_v2 }
  0x27   : > { %433 = vmatpush3.msra.mxu0 %v176_v10 }
  0x28   : > { %434 = vmatprep.subr.mxu0 %v542_v2 }
  0x29   : > { %435 = vmatpush3.msra.mxu0 %v175_v11 }
  0x2a   : > { %436 = vmatprep.subr.mxu0 %v542_v2 }
  0x2b   : > { %437 = vmatpush3.msra.mxu0 %v174_v12 }
  0x2c   : > { %438 = vmatprep.subr.mxu0 %v542_v2 }
  0x2d   : > { %439 = vmatpush3.msra.mxu0 %v173_v13 }
  0x2e   : > { %440 = vmatprep.subr.mxu0 %v542_v2 }
  0x2f   : > { %441 = vmatpush3.msra.mxu0 %v172_v14 }
  0x30   : > { %442 = vmatprep.subr.mxu0 %v542_v2 }
  0x31   : > { %443 = vmatpush3.msra.mxu0 %v171_v15 }
  0x32   : > { %444 = vmatprep.subr.mxu0 %v542_v2 }
  0x33   : > { %445 = vmatpush3.msra.mxu0 %v170_v16 }
  0x34   : > { %446 = vmatprep.subr.mxu0 %v542_v2 }
  0x35   : > { %447 = vmatpush3.msra.mxu0 %v169_v17 }
  0x36   : > { %449 = vmatmul.mubr.f32.vlgmr.msra.gmra.mxu0 %v168_v18 }
  0xf6   : > { %v251_v19 = vpop.f32.mrf.mxu0 }
  0xf7   : > { %v256_v20 = vsel %vm255_vm2, %v251_v19, -inf }
  0xf8   : > { %v257_v21 = vrot.slane %v256_v20, 4  ;;  %v450_v22 = vpop.f32.mrf.mxu0 }
  0xfa   : > { %v258_v23 = vmax.f32 %v256_v20, %v257_v21 }
  0xfc   : > { %v259_v24 = vrot.slane %v258_v23, 2 }
  0xfe   : > { %v260_v25 = vmax.f32 %v258_v23, %v259_v24  ;;  %266 = sbr.rel (%p392_p6) target bundleno = 294 (0x126), region = 36 }
 0x100   : > { %v261_v26 = vrot.slane %v260_v25, 1 }
 0x102   : > { %v262_v27 = vmax.f32 %v260_v25, %v261_v26 }
 0x103   : > { %v270_v37 = vld [vmem:[#allocation2] sm:$0x1]  ;;  %vm279_vm3 = vcmask 57344  }
 0x104   : > { %v267_v28 = vsub.f32 %v251_v19, %v262_v27 }
 0x106   : > { %v268_v29 = vmul.f32 1.442695, %v267_v28 }
 0x108   : > { %485 = vpow2.f32 %v268_v29 }
 0x115   : > { %v486_v30 = vpop.eup %485 }
 0x116   : > { %v271_v31 = vsel %vm255_vm2, %v486_v30, 0.0 }
 0x117   : > { %v272_v32 = vrot.slane %v271_v31, 4 }
 0x119   : > { %v273_v33 = vadd.f32 %v272_v32, %v271_v31 }
 0x11b   : > { %v274_v34 = vrot.slane %v273_v33, 2 }
 0x11d   : > { %v275_v35 = vadd.f32 %v274_v34, %v273_v33 }
 0x11f   : > { %v276_v36 = vrot.slane %v275_v35, 1 }
 0x121   : > { %v277_v38 = vadd.f32 %v276_v36, %v275_v35 }
 0x123   : > { %v278_v39 = vadd.f32 %v277_v38, %v270_v37 }
 0x125   : > { %280 = vst.msk [vmem:[#allocation2] sm:$0x1] %vm279_vm3, %v278_v39 }
 0x126 PF: > { %p393_p7 = scmp.lt.s32.totalorder %s531_s9, 4 }
 0x128   : > { %284 = sbr.rel (%p393_p7) target bundleno = 321 (0x141), region = 40 }
 0x12d   : > { %v285_v40 = vsel %vm255_vm2, %v251_v19, 0.0  ;;  %v293_v48 = vld [vmem:[#allocation3] sm:$0x1]  ;;  %vm296_vm4 = vcmask 57344  }
 0x12e   : > { %v286_v41 = vrot.slane %v285_v40, 4 }
 0x130   : > { %v287_v42 = vadd.f32 %v286_v41, %v285_v40 }
 0x132   : > { %v288_v43 = vrot.slane %v287_v42, 2 }
 0x134   : > { %v289_v44 = vadd.f32 %v288_v43, %v287_v42 }
 0x136   : > { %v290_v45 = vrot.slane %v289_v44, 1 }
 0x138   : > { %v291_v46 = vadd.f32 %v290_v45, %v289_v44 }
 0x13a   : > { %v292_v47 = vmul.f32 0.125, %v291_v46 }
 0x13c   : > { %v294_v49 = vsub.f32 %v292_v47, %v262_v27 }
 0x13e   : > { %v295_v50 = vadd.f32 %v294_v49, %v293_v48 }
 0x140   : > { %297 = vst.msk [vmem:[#allocation3] sm:$0x1] %vm296_vm4, %v295_v50 }
 0x141 PF: > { %p394_p8 = scmp.ne.s32.totalorder %s531_s9, 7 }
 0x143   : > { %301 = sbr.rel (%p394_p8) target bundleno = 350 (0x15e), region = 44 }
 0x148   : > { %v302_v51 = vld [vmem:[#allocation2] sm:$0x1]  ;;  %v305_v52 = vld [vmem:[#allocation3] sm:$0x1]  ;;  %vm309_vm5 = vcmask 57344  }
 0x149   : > { %487 = vlog2.f32 %v302_v51  ;;  %v306_v53 = vmul.f32 0.25, %v305_v52 }
 0x156   : > { %v488_v54 = vpop.eup %487 }
 0x157   : > { %v304_v55 = vmul.f32 0.6931472, %v488_v54 }
 0x159   : > { %v307_v56 = vsub.f32 %v306_v53, %v304_v55 }
 0x15b   : > { %v308_v57 = vmul.f32 -1.0, %v307_v56 }
 0x15d   : > { %310 = vst.msk [vmem:[#allocation4] sm:$0x1] %vm309_vm5, %v308_v57 }
 0x15e PF: > { %p646_p9 = scmp.eq.s32.totalorder %s385_s12, 7  ;;  %s544_s9 = smov [#allocation4]  }
 0x15f   : > { %s320_s29 = sshll.u32 %s544_s9, 4  ;;  %s321_s29 = int_to_ptr.vmem [resolvable:$true] %s320_s29 }
 0x160   : > { %s489_s30 = scalar_lea.vmem %s321_s29, 16  ;;  %s495_s3 = scalar_lea.vmem %s321_s29, 32 }
 0x161   : > { %p490_p10 = scmp.ne.s32.totalorder %s321_s29, %s489_s30  ;;  %p496_p13 = scmp.lt.s32.totalorder %s321_s29, %s321_s29 }
 0x162   : > { %p497_p0 = scmp.lt.s32.totalorder %s495_s3, %s489_s30 }
 0x163   : > { %p491_p11 = pnand %p490_p10, %p646_p9 }
 0x164   : > { %p498_p1 = por %p497_p0, %p496_p13 }
 0x165   : > { %p492_p12 = pneg %p491_p11 }
 0x167   : > { %p499_p2 = pnand %p498_p1, %p492_p12 }
 0x169   : > { %502 = shalt.err (!%p499_p2)
}
 0x16a   : > { %452 = dma.vmem_to_hbm [thread:$0]  (%p646_p9), %s321_s29, 16, %s672_s2, [#allocation5]  }
 0x16b   : > { %526 = dma.done.wait (%p646_p9), [#allocation5], 16  }
 0x16c   : > { %528 = vsyncadd (%p646_p9), [#allocation5], 4294967280 }
 0x16d PF: > { %s13_s11 = sadd.s32 1, %s539_s11   ;;  %s674_s9 = smov %s535_s10 }
 0x16e   : > { %p10_p3 = scmp.ge.s32.totalorder %s13_s11, 10   ;;  %s675_s10 = smov %s677_s13 }
 0x170   :  { %12 = sbr.rel (!%p10_p3) target bundleno = 2 (0x2), region = 75 }
 0x175   :  { %333 = vsyncpa [#allocation5], 1 }
 0x176   :  { %335 = vsyncpa [#allocation5 + $0x1], 1 }

</bundles_post_ra>
